<compile_context>
chip_gen: v5e
topology: v5e:2x2
jax: 0.10.0
libtpu: 0.0.40
codegen_flags: <defaults>
</compile_context>

<pallas_src>
import jax
import jax.numpy as jnp
from jax.experimental import pallas as pl
from jax.experimental.pallas import tpu as pltpu

FC2_IN = 5                  # nn.Linear(5, 1)
LANE = 128                  # TPU lane width
FLAT_W = FC2_IN * LANE      # 640: lane-dense row width (lcm(5, 128))
TILE_ROWS_LD = 2048         # lane-dense rows per grid step -> 5 MiB f32 / buffer


def _make_kernel(inv_n: float):
    """Kernel with the static 1/N scale baked in."""

    def kernel(x_ref, w_ref, b_ref, o_ref, acc_ref):
        # x_ref:  (tile_rows, 640) VMEM       w_ref: (1, 640) VMEM (grid-resident)
        # b_ref:  (1, 1) SMEM                 o_ref: (1, 1) VMEM (grid-resident)
        # acc_ref:(1, 640) f32 VMEM scratch (per-lane partial sums across steps)
        i = pl.program_id(0)

        @pl.when(i == 0)
        def _():
            acc_ref[...] = jnp.zeros_like(acc_ref)

        x = x_ref[...].astype(jnp.float32)          # (tile_rows, 640)
        w = w_ref[...].astype(jnp.float32)          # (1, 640) -> broadcast
        # Hot path: VPU mul + sublane-only reduce (cross-lane reduce deferred).
        acc_ref[...] += jnp.sum(x * w, axis=0, keepdims=True)

        @pl.when(i == pl.num_programs(0) - 1)
        def _():
            total = jnp.sum(acc_ref[...], keepdims=True)      # (1, 1) XLU reduce
            mean = total * inv_n + b_ref[0, 0]                # scalar bias (SMEM)
            o_ref[...] = jax.nn.sigmoid(mean)

    return kernel


def fc_discriminator_forward(x, w2, b2, *, tile_rows_ld: int = TILE_ROWS_LD):
    """x: (N, 5), w2: (1, 5), b2: (1,). Returns validity, shape (1,)."""
    n, f = x.shape
    assert f == FC2_IN
    assert tile_rows_ld % 8 == 0, "multi-step tile must be (8,128)-aligned"

    # ---- lane-dense repack: (N, 5) -> (rows_pad, 640), zero-padded tail ----
    rows_ld = -(-n // LANE)                        # lane-dense rows needed
    if rows_ld <= tile_rows_ld:
        tile = max(rows_ld, 1)                     # single-step grid
        rows_pad = tile
    else:
        tile = tile_rows_ld
        rows_pad = -(-rows_ld // tile) * tile      # pad to a tile multiple
    n_pad = rows_pad * LANE
    grid_steps = rows_pad // tile

    x_ld = jnp.pad(x, ((0, n_pad - n), (0, 0))).reshape(rows_pad, FLAT_W)
    # Flat element k corresponds to feature k % 5, so tiling w2 128x matches.
    w_tiled = jnp.tile(jnp.asarray(w2, jnp.float32).reshape(-1), LANE)
    w_tiled = w_tiled.reshape(1, FLAT_W)
    b2_2d = jnp.asarray(b2, jnp.float32).reshape(1, 1)

    out = pl.pallas_call(
        _make_kernel(1.0 / float(n)),
        out_shape=jax.ShapeDtypeStruct((1, 1), jnp.float32),
        grid=(grid_steps,),
        in_specs=[
            pl.BlockSpec((tile, FLAT_W), lambda i: (i, 0),
                         memory_space=pltpu.MemorySpace.VMEM),
            pl.BlockSpec((1, FLAT_W), lambda i: (0, 0),
                         memory_space=pltpu.MemorySpace.VMEM),
            pl.BlockSpec(memory_space=pltpu.MemorySpace.SMEM),   # bias scalar
        ],
        out_specs=pl.BlockSpec((1, 1), lambda i: (0, 0),
                               memory_space=pltpu.MemorySpace.VMEM),
        scratch_shapes=[pltpu.VMEM((1, FLAT_W), jnp.float32)],
        compiler_params=pltpu.CompilerParams(
            dimension_semantics=("arbitrary",),       # batch axis is a reduction
            vmem_limit_bytes=32 * 1024 * 1024,        # safe on v5e/v6e/v7x
        ),
    )(x_ld, w_tiled, b2_2d)
    return out.reshape(1)  # matches torch shape (1,)


def init_params(key, n_features):
    """Deterministic param init mirroring the module's __init__ shapes."""
    k1, k2, k3, k4 = jax.random.split(key, 4)
    # fc: Linear(n_features, 1) -- unused in forward, created for fidelity.
    fc_w = jax.random.uniform(k1, (1, n_features), jnp.float32, -0.1, 0.1)
    fc_b = jax.random.uniform(k2, (1,), jnp.float32, -0.1, 0.1)
    # fc2: Linear(5, 1) -- the layer actually used in forward.
    bound = 1.0 / jnp.sqrt(FC2_IN)
    fc2_w = jax.random.uniform(k3, (1, FC2_IN), jnp.float32, -bound, bound)
    fc2_b = jax.random.uniform(k4, (1,), jnp.float32, -bound, bound)
    return {"fc_w": fc_w, "fc_b": fc_b, "fc2_w": fc2_w, "fc2_b": fc2_b}


def _reference(x, w2, b2):
    return jax.nn.sigmoid((x @ w2.T + b2).mean(0))


if __name__ == "__main__":
    key = jax.random.PRNGKey(0)
    kp, kx, ka, kx2 = jax.random.split(key, 4)

    n_features = 16          # only used by the (unused) fc layer
    batch = 8                # N nodes / samples (small demo size)
    params = init_params(kp, n_features)

    x = jax.random.normal(kx, (batch, FC2_IN), jnp.float32)
    adj = jax.random.normal(ka, (batch, batch), jnp.float32)  # unused by forward

    validity = fc_discriminator_forward(x, params["fc2_w"], params["fc2_b"])
    validity = jax.block_until_ready(validity)

    ref = _reference(x, params["fc2_w"], params["fc2_b"])
    assert validity.shape == (1,)
    assert jnp.allclose(validity, ref, atol=1e-5, rtol=1e-5)

    # Exercise the multi-step pipelined path + zero-pad tail with a small tile
    # override (keeps the demo data small while still hitting 3 grid steps).
    n_big = 2600  # not a multiple of 128 -> padded tail rows
    x_big = jax.random.normal(kx2, (n_big, FC2_IN), jnp.float32)
    validity_big = fc_discriminator_forward(
        x_big, params["fc2_w"], params["fc2_b"], tile_rows_ld=8)
    validity_big = jax.block_until_ready(validity_big)
    ref_big = _reference(x_big, params["fc2_w"], params["fc2_b"])
    assert validity_big.shape == (1,)
    assert jnp.allclose(validity_big, ref_big, atol=1e-5, rtol=1e-5)

    print("KERNEL_OK")
</pallas_src>

<mosaic_0001>
module attributes {stable_mosaic.version = 11 : i64} {
  func.func @kernel(%arg0: i32, %arg1: memref<1x640xf32, #tpu.memory_space<vmem>>, %arg2: memref<1x640xf32, #tpu.memory_space<vmem>>, %arg3: memref<1x1xf32, #tpu.memory_space<smem>>, %arg4: memref<1x1xf32, #tpu.memory_space<vmem>>, %arg5: memref<1x640xf32, #tpu.memory_space<vmem>>) attributes {dimension_semantics = [#tpu.dimension_semantics<arbitrary>], iteration_bounds = array<i64: 1>, scalar_prefetch = 0 : i64, scratch_operands = 1 : i64, tpu.core_type = #tpu.core_type<tc>, window_params = [{transform_indices = @transform_0, window_bounds = array<i64: 1, 640>}, {pipeline_mode = #tpu.pipeline_mode<synchronous>, transform_indices = @transform_1, window_bounds = array<i64: 1, 640>}, {transform_indices = @transform_2, window_bounds = array<i64: 1, 1>}, {pipeline_mode = #tpu.pipeline_mode<synchronous>, transform_indices = @transform_3, window_bounds = array<i64: 1, 1>}]} {
    %c0_i32 = arith.constant 0 : i32
    %0 = arith.cmpi eq, %arg0, %c0_i32 : i32
    %1 = arith.extui %0 : i1 to i32
    %c0_i32_0 = arith.constant 0 : i32
    %2 = arith.cmpi ne, %1, %c0_i32_0 : i32
    scf.if %2 {
      %cst_10 = arith.constant 0.000000e+00 : f32
      %14 = vector.broadcast %cst_10 : f32 to vector<1x640xf32>
      %c0_11 = arith.constant 0 : index
      %c0_12 = arith.constant 0 : index
      %15 = vector.load %arg5[%c0_11, %c0_12] : memref<1x640xf32, #tpu.memory_space<vmem>>, vector<1x640xf32>
      tpu.vector_store %arg5[%c0_11, %c0_12], %14 {strides = array<i32>} : memref<1x640xf32, #tpu.memory_space<vmem>>, vector<1x640xf32>,
    } else {
    }
    %c0 = arith.constant 0 : index
    %c0_1 = arith.constant 0 : index
    %3 = vector.load %arg1[%c0, %c0_1] : memref<1x640xf32, #tpu.memory_space<vmem>>, vector<1x640xf32>
    %c0_2 = arith.constant 0 : index
    %c0_3 = arith.constant 0 : index
    %4 = vector.load %arg2[%c0_2, %c0_3] : memref<1x640xf32, #tpu.memory_space<vmem>>, vector<1x640xf32>
    %c0_4 = arith.constant 0 : index
    %c0_5 = arith.constant 0 : index
    %5 = vector.load %arg5[%c0_4, %c0_5] : memref<1x640xf32, #tpu.memory_space<vmem>>, vector<1x640xf32>
    %6 = arith.mulf %3, %4 : vector<1x640xf32>
    %cst = arith.constant dense<0.000000e+00> : vector<640xf32>
    %7 = vector.multi_reduction <add>, %6, %cst [0] : vector<1x640xf32> to vector<640xf32>
    %8 = vector.shape_cast %7 : vector<640xf32> to vector<1x640xf32>
    %9 = arith.addf %5, %8 : vector<1x640xf32>
    %c0_6 = arith.constant 0 : index
    %c0_7 = arith.constant 0 : index
    %10 = vector.load %arg5[%c0_6, %c0_7] : memref<1x640xf32, #tpu.memory_space<vmem>>, vector<1x640xf32>
    tpu.vector_store %arg5[%c0_6, %c0_7], %9 {strides = array<i32>} : memref<1x640xf32, #tpu.memory_space<vmem>>, vector<1x640xf32>,
    %c0_i32_8 = arith.constant 0 : i32
    %11 = arith.cmpi eq, %arg0, %c0_i32_8 : i32
    %12 = arith.extui %11 : i1 to i32
    %c0_i32_9 = arith.constant 0 : i32
    %13 = arith.cmpi ne, %12, %c0_i32_9 : i32
    scf.if %13 {
      %c0_10 = arith.constant 0 : index
      %c0_11 = arith.constant 0 : index
      %14 = vector.load %arg5[%c0_10, %c0_11] : memref<1x640xf32, #tpu.memory_space<vmem>>, vector<1x640xf32>
      %15 = vector.shape_cast %14 : vector<1x640xf32> to vector<1x1x640xf32>
      %cst_12 = arith.constant dense<0.000000e+00> : vector<1xf32>
      %16 = vector.multi_reduction <add>, %15, %cst_12 [1, 2] : vector<1x1x640xf32> to vector<1xf32>
      %17 = vector.shape_cast %16 : vector<1xf32> to vector<1x1x1xf32>
      %18 = vector.extract %17[0, 0, 0] : f32 from vector<1x1x1xf32>
      %19 = vector.broadcast %18 : f32 to vector<1x1xf32>
      %cst_13 = arith.constant 1.250000e-01 : f32
      %20 = vector.broadcast %cst_13 : f32 to vector<1x1xf32>
      %21 = arith.mulf %19, %20 : vector<1x1xf32>
      %c0_14 = arith.constant 0 : index
      %c0_15 = arith.constant 0 : index
      %22 = memref.load %arg3[%c0_14, %c0_15] : memref<1x1xf32, #tpu.memory_space<smem>>
      %23 = vector.broadcast %22 : f32 to vector<1x1xf32>
      %24 = arith.addf %21, %23 : vector<1x1xf32>
      %25 = arith.negf %24 : vector<1x1xf32>
      %26 = math.exp %25 : vector<1x1xf32>
      %cst_16 = arith.constant 1.000000e+00 : f32
      %27 = vector.broadcast %cst_16 : f32 to vector<1x1xf32>
      %28 = arith.addf %27, %26 : vector<1x1xf32>
      %29 = arith.divf %27, %28 : vector<1x1xf32>
      %c0_17 = arith.constant 0 : index
      %c0_18 = arith.constant 0 : index
      %30 = vector.load %arg4[%c0_17, %c0_18] : memref<1x1xf32, #tpu.memory_space<vmem>>, vector<1x1xf32>
      tpu.vector_store %arg4[%c0_17, %c0_18], %29 {strides = array<i32>} : memref<1x1xf32, #tpu.memory_space<vmem>>, vector<1x1xf32>,
    } else {
    }
    return
  }
  func.func @transform_0(%arg0: i32) -> (i32, i32) {
    %c0_i32 = arith.constant 0 : i32
    %c0_i32_0 = arith.constant 0 : i32
    return %arg0, %c0_i32 : i32, i32
  }
  func.func @transform_1(%arg0: i32) -> (i32, i32) {
    %c0_i32 = arith.constant 0 : i32
    %c0_i32_0 = arith.constant 0 : i32
    %c0_i32_1 = arith.constant 0 : i32
    return %c0_i32, %c0_i32_0 : i32, i32
  }
  func.func @transform_2(%arg0: i32) -> (i32, i32) {
    %c0_i32 = arith.constant 0 : i32
    %c0_i32_0 = arith.constant 0 : i32
    %c0_i32_1 = arith.constant 0 : i32
    return %c0_i32, %c0_i32_0 : i32, i32
  }
  func.func @transform_3(%arg0: i32) -> (i32, i32) {
    %c0_i32 = arith.constant 0 : i32
    %c0_i32_0 = arith.constant 0 : i32
    %c0_i32_1 = arith.constant 0 : i32
    return %c0_i32, %c0_i32_0 : i32, i32
  }
}

</mosaic_0001>

<bundles_post_ra>
// kernel: tpu_custom_call.1
= control target key start
LH: loop header
LB: loop body
LE: loop exit
PB: predicated region body
PF: predicated region fallthrough
CT: control target
= control target key end

     0   :  { %9 = vsyncpa [#allocation5], 0  ;;  %s267_s0 = inlined_call_operand.hbm [shape: f32[1,640], index: 0, kind: input, shape index: {}]   ;;  %s268_s1 = inlined_call_operand.hbm [shape: f32[1,640], index: 1, kind: input, shape index: {}]   ;;  %s269_s2 = inlined_call_operand.<no memory space> [shape: f32[1,1], index: 2, kind: input, shape index: {}]   ;;  %s270_s3 = inlined_call_operand.hbm [shape: f32[1,1], index: 3, kind: output, shape index: {}]  }
   0x1   :  { %10 = vsyncpa [#allocation8], 0 }
   0x2   :  { %11 = vsyncpa [#allocation6], 0  ;;  %s17_s14 = sshll.u32 %s267_s0, 4  ;;  %s231_s15 = smov [#allocation4]   ;;  %s18_s14 = int_to_ptr.hbm [resolvable:$true] %s17_s14 }
   0x3   :  { %s19_s16 = sshll.u32 %s231_s15, 4  ;;  %s28_s19 = sshll.u32 %s268_s1, 4  ;;  %s20_s16 = int_to_ptr.vmem [resolvable:$true] %s19_s16  ;;  %s29_s19 = int_to_ptr.hbm [resolvable:$true] %s28_s19 }
   0x4   :  { %22 = dma.hbm_to_vmem [thread:$0]  %s18_s14, 80, %s20_s16, [#allocation5]  }
   0x5   :  { %s232_s20 = smov [#allocation7]  }
   0x6   :  { %s30_s21 = sshll.u32 %s232_s20, 4  ;;  %s31_s21 = int_to_ptr.vmem [resolvable:$true] %s30_s21 }
   0x7   :  { %33 = dma.hbm_to_vmem [thread:$0]  %s29_s19, 80, %s31_s21, [#allocation8]  }
   0x8   :  { %225 = dma.done.wait [#allocation5], 80  }
   0x9   :  { %226 = vsyncadd [#allocation5], 4294967216 }
   0xa   :  { %227 = dma.done.wait [#allocation8], 80  }
   0xb   :  { %228 = vsyncadd [#allocation8], 4294967216  ;;  %v48_v0 = vlaneseq  ;;  %v233_v1 = vmov 0.0   ;;  %v53_v2 = vld [vmem:[#allocation4] sm:$0x1f]  ;;  %vm79_vm1 = vcmask 1040384   ;;  %v101_v30 = vstv %s269_s2 }
   0xc   :  { %v54_v3 = vld [vmem:[#allocation7] sm:$0x1f]  ;;  %s234_s23 = smov [#allocation9]   ;;  %s131_s2 = sshll.u32 %s270_s3, 4  ;;  %vm122_vm5 = vcmask 0   ;;  %s132_s2 = int_to_ptr.hbm [resolvable:$true] %s131_s2 }
   0xd   :  { %vm50_vm0 = vcmp.lt.s32.totalorder %v48_v0, 640  ;;  %v56_v4 = vmul.f32 %v54_v3, %v53_v2  ;;  %s129_s24 = sshll.u32 %s234_s23, 4  ;;  %s130_s24 = int_to_ptr.vmem [resolvable:$true] %s129_s24 }
   0xe   :  { %52 = vst.msk [vmem:[#allocation2] sm:$0x1f] %vm50_vm0, %v233_v1 }
  0x15   :  { %v55_v5 = vld [vmem:[#allocation2] sm:$0x1f] }
  0x16   :  { %v58_v6 = vadd.f32 %v56_v4, %v55_v5 }
  0x18   :  { %63 = vst.msk [vmem:[#allocation2] sm:$0x1f] %vm50_vm0, %v58_v6 }
  0x1f   :  { %v67_v7 = vld [vmem:[#allocation2] sm:$0x1f] }
  0x20   :  { %v69_v8 = vperm.slane %v67_v7, 0  ;;  %v70_v9 = vperm.slane %v67_v7, 1  ;;  %v71_v10 = vperm.slane %v67_v7, 2  ;;  %v72_v11 = vperm.slane %v67_v7, 3 }
  0x21   :  { %v73_v12 = vperm.slane %v67_v7, 4 }
  0x22   :  { %v80_v13 = vsel %vm79_vm1, %v69_v8, 0.0  ;;  %v81_v14 = vsel %vm79_vm1, %v70_v9, 0.0  ;;  %v83_v15 = vsel %vm79_vm1, %v71_v10, 0.0  ;;  %v85_v17 = vsel %vm79_vm1, %v72_v11, 0.0 }
  0x23   :  { %v82_v16 = vadd.f32 %v81_v14, %v80_v13  ;;  %v87_v19 = vsel %vm79_vm1, %v73_v12, 0.0 }
  0x25   :  { %v84_v18 = vadd.f32 %v83_v15, %v82_v16 }
  0x27   :  { %v86_v20 = vadd.f32 %v85_v17, %v84_v18 }
  0x29   :  { %v88_v21 = vadd.f32 %v87_v19, %v86_v20 }
  0x2b   :  { %89 = vadd.xlane.f32.xlu0 %v88_v21 }
  0x9e   :  { %v90_v22 = vpop.xlane.xlu0 %89 }
  0x9f   :  { %v91_v23 = vrot.slane %v90_v22, 4 }
  0xa1   :  { %v92_v24 = vadd.f32 %v91_v23, %v90_v22 }
  0xa3   :  { %v93_v25 = vrot.slane %v92_v24, 2 }
  0xa5   :  { %v94_v26 = vadd.f32 %v93_v25, %v92_v24 }
  0xa7   :  { %v95_v27 = vrot.slane %v94_v26, 1 }
  0xa9   :  { %v96_v28 = vadd.f32 %v95_v27, %v94_v26 }
  0xab   :  { %143 = vpush %v96_v28 }
  0xdc   :  { %s144_s0 = spop %143 }
  0xdd   :  { %v98_v29 = vstv %s144_s0 }
  0xde   :  { %v99_v31 = vmul.f32 0.125, %v98_v29 }
  0xe0   :  { %v102_v32 = vadd.f32 %v101_v30, %v99_v31 }
  0xe2   :  { %v142_v33 = vmul.f32 -1.442695, %v102_v32 }
  0xe4   :  { %149 = vpow2.f32 %v142_v33 }
  0xea   :  { %v150_v34 = vpop.eup %149 }
  0xeb   :  { %v106_v35 = vadd.f32 1.0, %v150_v34 }
  0xed   :  { %151 = vrcp.f32 %v106_v35  ;;  %v118_v39 = vand.u32 2147483648, %v106_v35  ;;  %v116_v41 = vand.u32 2147483647, %v106_v35  ;;  %vm112_vm3 = vweird.f32 %v106_v35 }
  0xef   :  { %v119_v43 = vor.u32 1.1754944e-38, %v118_v39  ;;  %vm117_vm6 = vcmp.eq.f32.partialorder %v116_v41, 8.507059e+37 }
  0xf3   :  { %v152_v36 = vpop.eup %151 }
  0xf4   :  { %v108_v37 = vmul.f32 %v152_v36, %v106_v35  ;;  %vm113_vm2 = vweird.f32 %v152_v36 }
  0xf5   :  { %vm114_vm4 = vmor %vm112_vm3, %vm113_vm2 }
  0xf6   :  { %v109_v38 = vsub.f32 1.0, %v108_v37 }
  0xf8   :  { %v110_v40 = vmul.f32 %v152_v36, %v109_v38 }
  0xfa   :  { %v111_v42 = vadd.f32 %v152_v36, %v110_v40 }
  0xfc   :  { %v115_v44 = vsel %vm114_vm4, %v152_v36, %v111_v42 }
  0xfd   :  { %v120_v45 = vsel %vm117_vm6, %v119_v43, %v115_v44 }
  0xfe   :  { %123 = vst.msk [vmem:[#allocation9] sm:$0x1] %vm122_vm5, %v120_v45 }
  0xff   :  { %134 = dma.vmem_to_hbm [thread:$0]  %s130_s24, 16, %s132_s2, [#allocation6]  }
 0x100   :  { %229 = dma.done.wait [#allocation6], 16  }
 0x101   :  { %230 = vsyncadd [#allocation6], 4294967280 }
 0x102   :  { %139 = vsyncpa [#allocation5], 1 }
 0x103   :  { %140 = vsyncpa [#allocation8], 1 }
 0x104   :  { %141 = vsyncpa [#allocation6], 1 }

</bundles_post_ra>
